<compile_context>
chip_gen: v7x
topology: tpu7x:2x2x1
jax: 0.10.0
libtpu: 0.0.40
codegen_flags: <defaults>
</compile_context>

<pallas_src>
import jax
import jax.numpy as jnp
from jax.experimental import pallas as pl
from jax.experimental.pallas import tpu as pltpu

LANES = 128            # lane width (fast axis)
SUBLANES = 8           # sublane granularity
MAX_BLOCK_ROWS = 2048  # (3, 2048, 128) f32 = 3 MiB/block, 6 MiB double-buffered


def _cdiv(a, b):
    return -(-a // b)


def _round_up(x, m):
    return _cdiv(x, m) * m


def _has_multiple_tensorcores():
    """Best-effort detection of a multi-TensorCore chip (v7x).  Safe fallback: False."""
    try:
        kind = jax.devices()[0].device_kind.lower()
    except Exception:
        return False
    return "v7" in kind


def _pick_tiling(rows, multi_core):
    """Choose (block_rows, grid) for the ray-row axis."""
    if rows <= MAX_BLOCK_ROWS:
        # Single block covering the whole (possibly non-8-multiple) row extent:
        # block dim == full array dim, so the (8,128) divisibility rule is satisfied.
        return rows, 1
    br = MAX_BLOCK_ROWS
    grid = _cdiv(rows, br)
    if multi_core and grid > 1 and grid % 2 == 1:
        # Balance both TensorCores: prefer an even step count.
        br2 = _round_up(_cdiv(rows, grid + 1), SUBLANES)
        if br2 >= SUBLANES:
            br, grid = br2, _cdiv(rows, br2)
    return br, grid


def _rays_kernel(params_ref, rays_d_ref):
    """Synthesize one (3, BR, 128) channel-major tile of rays_d.

    params_ref : SMEM (11,) f32 scalar-prefetched:
                 [1/W, W, a0, b0, c0, a1, b1, c1, a2, b2, c2]
                 where rays_d[c] = a_c*u + b_c*v + c_c (intrinsics pre-folded).
    rays_d_ref : VMEM (3, BR, 128) output tile (channel-major, lane-dense).
    """
    inv_w = params_ref[0]
    w = params_ref[1]

    _, br, nl = rays_d_ref.shape
    base = pl.program_id(0) * br

    # Flat ray index n = global_row * 128 + lane; exact in f32 for n < 2^24
    # (asserted in the wrapper).
    row = jax.lax.broadcasted_iota(jnp.int32, (br, nl), 0)
    lane = jax.lax.broadcasted_iota(jnp.int32, (br, nl), 1)
    n = ((base + row) * nl + lane).astype(jnp.float32)

    # Pixel coords: v = n // W, u = n % W, via f32 divide + one-step exact correction.
    v0 = jnp.floor((n + 0.5) * inv_w)
    u0 = n - v0 * w
    lo = (u0 < 0.0).astype(jnp.float32)
    hi = (u0 >= w).astype(jnp.float32)
    v = v0 - lo + hi
    u = u0 + lo * w - hi * w

    # rays_d[c] = a_c*u + b_c*v + c_c   (VPU scalar*vector FMAs; cast only at store).
    dt = rays_d_ref.dtype
    rays_d_ref[0] = (params_ref[2] * u + params_ref[3] * v + params_ref[4]).astype(dt)
    rays_d_ref[1] = (params_ref[5] * u + params_ref[6] * v + params_ref[7]).astype(dt)
    rays_d_ref[2] = (params_ref[8] * u + params_ref[9] * v + params_ref[10]).astype(dt)


def get_rays_pallas(pose, K, H, W, out_dtype=jnp.float32):
    """Fused get_ray_directions + get_rays.

    pose: (3,4) f32 c2w [R|t];  K: (3,3) f32 intrinsics;  H, W: python ints.
    Returns channel-major rays_o (3, N) and rays_d (3, N), N = H*W.
    (Channel-major end-to-end avoids any transpose pass; a consumer wanting the
    PyTorch (N,3) layout folds the transpose into its first op.  out_dtype can be
    set to bf16 on writeback-bound chips if the downstream encoder tolerates it.)
    """
    N = H * W
    # f32 flat-index / floor-divide trick is only exact below 2^24 rays.
    assert N < (1 << 24), "get_rays_pallas: H*W must be < 2^24 for exact f32 indexing"

    rows = _cdiv(N, LANES)                     # rows of 128 rays needed
    multi_core = _has_multiple_tensorcores()
    BR, grid = _pick_tiling(rows, multi_core)

    pose = pose.astype(jnp.float32)
    K = K.astype(jnp.float32)
    fx, fy, cx, cy = K[0, 0], K[1, 1], K[0, 2], K[1, 2]
    R = pose[:, :3]
    a = R[:, 0] / fx                                           # (3,)
    b = R[:, 1] / fy                                           # (3,)
    c = R[:, 2] - a * (cx - 0.5) - b * (cy - 0.5)              # (3,)
    params = jnp.concatenate([
        jnp.array([1.0 / W, float(W)], dtype=jnp.float32),
        jnp.stack([a, b, c], axis=1).reshape(-1),              # a0,b0,c0,a1,b1,c1,...
    ])

    if multi_core and grid >= 2:
        dim_sem = (pltpu.CORE_PARALLEL,)
    else:
        dim_sem = ("parallel",)

    rays_d_slab = pl.pallas_call(
        _rays_kernel,
        grid_spec=pltpu.PrefetchScalarGridSpec(
            num_scalar_prefetch=1,
            grid=(grid,),
            in_specs=[],                          # no HBM tensor reads at all
            out_specs=pl.BlockSpec((3, BR, LANES), lambda i, p: (0, i, 0)),
        ),
        out_shape=jax.ShapeDtypeStruct((3, rows, LANES), out_dtype),
        compiler_params=pltpu.CompilerParams(dimension_semantics=dim_sem),
    )(params)

    rays_d = rays_d_slab.reshape(3, rows * LANES)      # free: merges trailing dims
    if rows * LANES != N:
        # Rare ragged case (N not a multiple of 128): trim the <128-ray tail.
        rays_d = rays_d[:, :N]

    # rays_o is just the translation column broadcast over rays -- keep it lazy,
    # no kernel I/O, XLA fuses it into the consumer.
    rays_o = jnp.broadcast_to(pose[:, 3:4], (3, N))
    return rays_o, rays_d


def nerf_system_forward(batch, K, H, W):
    """Equivalent of NeRFSystem.forward(batch, split='test') up to render()."""
    pose = batch["pose"]                          # (3, 4)
    ts = batch["ts"][0]
    rays_o, rays_d = get_rays_pallas(pose, K, H, W)
    # embed_id = ts * ones(N): no data dependence -> plain jnp.full, not kernel output.
    embed_id = jnp.full((H * W,), ts, dtype=batch["ts"].dtype)
    # TODO(synk): render(self.model, rays_o, rays_d, embed_id, ...) -- NGPGv2 hash-grid
    # volumetric rendering is out of scope for a single Pallas kernel.
    return rays_o, rays_d, embed_id


def _reference(pose, K, H, W, ts):
    """Pure-JAX reference matching PyTorch get_ray_directions + get_rays semantics."""
    u, v = jnp.meshgrid(jnp.arange(W, dtype=jnp.float32),
                        jnp.arange(H, dtype=jnp.float32), indexing="xy")
    directions = jnp.stack([(u - K[0, 2] + 0.5) / K[0, 0],
                            (v - K[1, 2] + 0.5) / K[1, 1],
                            jnp.ones_like(u)], axis=-1).reshape(-1, 3)
    ref_rays_d = (directions[:, 0:1] * pose[:, 0]
                  + directions[:, 1:2] * pose[:, 1]
                  + directions[:, 2:3] * pose[:, 2])   # == directions @ pose[:, :3].T
    ref_rays_o = jnp.broadcast_to(pose[:, 3], ref_rays_d.shape)
    ref_embed = jnp.full((H * W,), ts, dtype=jnp.int32)
    return ref_rays_o, ref_rays_d, ref_embed


if __name__ == "__main__":
    key = jax.random.PRNGKey(0)
    pose = jax.random.normal(key, (3, 4), dtype=jnp.float32)

    # Two small cases: N a multiple of 128 (no-slice fast path) and a ragged N.
    for (H, W) in [(32, 32), (24, 20)]:
        N = H * W
        fx = fy = 20.0
        K = jnp.array([[fx, 0.0, W / 2.0],
                       [0.0, fy, H / 2.0],
                       [0.0, 0.0, 1.0]], dtype=jnp.float32)
        batch = {"pose": pose, "ts": jnp.array([3], dtype=jnp.int32)}

        rays_o, rays_d, embed_id = nerf_system_forward(batch, K, H, W)
        jax.block_until_ready((rays_o, rays_d, embed_id))

        ref_rays_o, ref_rays_d, ref_embed = _reference(pose, K, H, W, 3)

        assert rays_d.shape == (3, N) and rays_o.shape == (3, N)
        assert jnp.allclose(rays_d.T, ref_rays_d, atol=1e-5), f"rays_d mismatch {H}x{W}"
        assert jnp.allclose(rays_o.T, ref_rays_o, atol=1e-6), f"rays_o mismatch {H}x{W}"
        assert jnp.array_equal(embed_id, ref_embed), f"embed_id mismatch {H}x{W}"

    print("KERNEL_OK")
</pallas_src>

<mosaic_0001>
module attributes {stable_mosaic.version = 11 : i64} {
  func.func @_rays_kernel(%arg0: i32, %arg1: memref<11xf32, #tpu.memory_space<smem>>, %arg2: memref<3x8x128xf32, #tpu.memory_space<vmem>>) attributes {dimension_semantics = [#tpu.dimension_semantics<parallel>], iteration_bounds = array<i64: 1>, scalar_prefetch = 1 : i64, scratch_operands = 0 : i64, tpu.core_type = #tpu.core_type<tc>, window_params = [{transform_indices = @transform_0, window_bounds = array<i64: 3, 8, 128>}]} {
    %c0 = arith.constant 0 : index
    %0 = memref.load %arg1[%c0] : memref<11xf32, #tpu.memory_space<smem>>
    %c1 = arith.constant 1 : index
    %1 = memref.load %arg1[%c1] : memref<11xf32, #tpu.memory_space<smem>>
    %c8_i32 = arith.constant 8 : i32
    %2 = arith.muli %arg0, %c8_i32 : i32
    %3 = tpu.iota {dimensions = array<i32: 0>} : vector<8x128xi32>
    %4 = tpu.iota {dimensions = array<i32: 1>} : vector<8x128xi32>
    %5 = vector.broadcast %2 : i32 to vector<8x128xi32>
    %6 = arith.addi %5, %3 : vector<8x128xi32>
    %c128_i32 = arith.constant 128 : i32
    %7 = vector.broadcast %c128_i32 : i32 to vector<8x128xi32>
    %8 = arith.muli %6, %7 : vector<8x128xi32>
    %9 = arith.addi %8, %4 : vector<8x128xi32>
    %10 = arith.sitofp %9 : vector<8x128xi32> to vector<8x128xf32>
    %cst = arith.constant 5.000000e-01 : f32
    %11 = vector.broadcast %cst : f32 to vector<8x128xf32>
    %12 = arith.addf %10, %11 : vector<8x128xf32>
    %13 = vector.broadcast %0 : f32 to vector<8x128xf32>
    %14 = arith.mulf %12, %13 : vector<8x128xf32>
    %15 = math.floor %14 : vector<8x128xf32>
    %16 = vector.broadcast %1 : f32 to vector<8x128xf32>
    %17 = arith.mulf %15, %16 : vector<8x128xf32>
    %18 = arith.subf %10, %17 : vector<8x128xf32>
    %cst_0 = arith.constant 0.000000e+00 : f32
    %19 = vector.broadcast %cst_0 : f32 to vector<8x128xf32>
    %20 = arith.cmpf olt, %18, %19 : vector<8x128xf32>
    %21 = arith.extui %20 : vector<8x128xi1> to vector<8x128xi32>
    %22 = arith.sitofp %21 : vector<8x128xi32> to vector<8x128xf32>
    %23 = vector.broadcast %1 : f32 to vector<8x128xf32>
    %24 = arith.cmpf oge, %18, %23 : vector<8x128xf32>
    %25 = arith.extui %24 : vector<8x128xi1> to vector<8x128xi32>
    %26 = arith.sitofp %25 : vector<8x128xi32> to vector<8x128xf32>
    %27 = arith.subf %15, %22 : vector<8x128xf32>
    %28 = arith.addf %27, %26 : vector<8x128xf32>
    %29 = vector.broadcast %1 : f32 to vector<8x128xf32>
    %30 = arith.mulf %22, %29 : vector<8x128xf32>
    %31 = arith.addf %18, %30 : vector<8x128xf32>
    %32 = vector.broadcast %1 : f32 to vector<8x128xf32>
    %33 = arith.mulf %26, %32 : vector<8x128xf32>
    %34 = arith.subf %31, %33 : vector<8x128xf32>
    %c2 = arith.constant 2 : index
    %35 = memref.load %arg1[%c2] : memref<11xf32, #tpu.memory_space<smem>>
    %36 = vector.broadcast %35 : f32 to vector<8x128xf32>
    %37 = arith.mulf %36, %34 : vector<8x128xf32>
    %c3 = arith.constant 3 : index
    %38 = memref.load %arg1[%c3] : memref<11xf32, #tpu.memory_space<smem>>
    %39 = vector.broadcast %38 : f32 to vector<8x128xf32>
    %40 = arith.mulf %39, %28 : vector<8x128xf32>
    %41 = arith.addf %37, %40 : vector<8x128xf32>
    %c4 = arith.constant 4 : index
    %42 = memref.load %arg1[%c4] : memref<11xf32, #tpu.memory_space<smem>>
    %43 = vector.broadcast %42 : f32 to vector<8x128xf32>
    %44 = arith.addf %41, %43 : vector<8x128xf32>
    %c0_1 = arith.constant 0 : index
    %c0_2 = arith.constant 0 : index
    %c0_3 = arith.constant 0 : index
    %45 = vector.load %arg2[%c0_1, %c0_2, %c0_3] : memref<3x8x128xf32, #tpu.memory_space<vmem>>, vector<1x8x128xf32>
    %46 = vector.shape_cast %45 : vector<1x8x128xf32> to vector<8x128xf32>
    %47 = vector.shape_cast %44 : vector<8x128xf32> to vector<1x8x128xf32>
    tpu.vector_store %arg2[%c0_1, %c0_2, %c0_3], %47 {strides = array<i32>} : memref<3x8x128xf32, #tpu.memory_space<vmem>>, vector<1x8x128xf32>,
    %c5 = arith.constant 5 : index
    %48 = memref.load %arg1[%c5] : memref<11xf32, #tpu.memory_space<smem>>
    %49 = vector.broadcast %48 : f32 to vector<8x128xf32>
    %50 = arith.mulf %49, %34 : vector<8x128xf32>
    %c6 = arith.constant 6 : index
    %51 = memref.load %arg1[%c6] : memref<11xf32, #tpu.memory_space<smem>>
    %52 = vector.broadcast %51 : f32 to vector<8x128xf32>
    %53 = arith.mulf %52, %28 : vector<8x128xf32>
    %54 = arith.addf %50, %53 : vector<8x128xf32>
    %c7 = arith.constant 7 : index
    %55 = memref.load %arg1[%c7] : memref<11xf32, #tpu.memory_space<smem>>
    %56 = vector.broadcast %55 : f32 to vector<8x128xf32>
    %57 = arith.addf %54, %56 : vector<8x128xf32>
    %c1_4 = arith.constant 1 : index
    %c0_5 = arith.constant 0 : index
    %c0_6 = arith.constant 0 : index
    %58 = vector.load %arg2[%c1_4, %c0_5, %c0_6] : memref<3x8x128xf32, #tpu.memory_space<vmem>>, vector<1x8x128xf32>
    %59 = vector.shape_cast %58 : vector<1x8x128xf32> to vector<8x128xf32>
    %60 = vector.shape_cast %57 : vector<8x128xf32> to vector<1x8x128xf32>
    tpu.vector_store %arg2[%c1_4, %c0_5, %c0_6], %60 {strides = array<i32>} : memref<3x8x128xf32, #tpu.memory_space<vmem>>, vector<1x8x128xf32>,
    %c8 = arith.constant 8 : index
    %61 = memref.load %arg1[%c8] : memref<11xf32, #tpu.memory_space<smem>>
    %62 = vector.broadcast %61 : f32 to vector<8x128xf32>
    %63 = arith.mulf %62, %34 : vector<8x128xf32>
    %c9 = arith.constant 9 : index
    %64 = memref.load %arg1[%c9] : memref<11xf32, #tpu.memory_space<smem>>
    %65 = vector.broadcast %64 : f32 to vector<8x128xf32>
    %66 = arith.mulf %65, %28 : vector<8x128xf32>
    %67 = arith.addf %63, %66 : vector<8x128xf32>
    %c10 = arith.constant 10 : index
    %68 = memref.load %arg1[%c10] : memref<11xf32, #tpu.memory_space<smem>>
    %69 = vector.broadcast %68 : f32 to vector<8x128xf32>
    %70 = arith.addf %67, %69 : vector<8x128xf32>
    %c2_7 = arith.constant 2 : index
    %c0_8 = arith.constant 0 : index
    %c0_9 = arith.constant 0 : index
    %71 = vector.load %arg2[%c2_7, %c0_8, %c0_9] : memref<3x8x128xf32, #tpu.memory_space<vmem>>, vector<1x8x128xf32>
    %72 = vector.shape_cast %71 : vector<1x8x128xf32> to vector<8x128xf32>
    %73 = vector.shape_cast %70 : vector<8x128xf32> to vector<1x8x128xf32>
    tpu.vector_store %arg2[%c2_7, %c0_8, %c0_9], %73 {strides = array<i32>} : memref<3x8x128xf32, #tpu.memory_space<vmem>>, vector<1x8x128xf32>,
    return
  }
  func.func @transform_0(%arg0: i32, %arg1: memref<11xf32, #tpu.memory_space<smem>>) -> (i32, i32, i32) {
    %c0_i32 = arith.constant 0 : i32
    %c0_i32_0 = arith.constant 0 : i32
    %c0_i32_1 = arith.constant 0 : i32
    return %c0_i32, %arg0, %c0_i32_0 : i32, i32, i32
  }
}

</mosaic_0001>

<bundles_post_ra>
// kernel: tpu_custom_call.1
= control target key start
LH: loop header
LB: loop body
LE: loop exit
PB: predicated region body
PF: predicated region fallthrough
CT: control target
= control target key end

     0   :  { %s188_s0 = inlined_call_operand.hbm [shape: f32[11], index: 0, kind: input, shape index: {}]   ;;  %s189_s1 = inlined_call_operand.hbm [shape: f32[3,8,128], index: 1, kind: output, shape index: {}]  }
   0x1   :  { %s110_s8 = scalar_lea.hbm %s188_s0, 16 }
   0x2   :  { %p111_p0 = scmp.ne.s32.totalorder %s188_s0, %s110_s8  ;;  %p114_p1 = scmp.lt.u32.totalorder %s110_s8, %s188_s0 }
   0x4   :  { %p116_p2 = pnand %p114_p1, %p111_p0 }
   0x6   :  { %119 = shalt.err (!%p116_p2)  }
   0x7   :  { %s146_s13 = smov [#allocation3]  }
   0x8   :  { %7 = dma.hbm_to_smem %s188_s0, 16, %s146_s13, [#allocation2] }
   0x9   :  { %142 = dma.done.wait [#allocation2], 16 }
   0xa   :  { %143 = vsyncadd [#allocation2], 4294967280 }
   0xb   :  { %9 = sfence }
   0xc   :  { %v14_v0 = vlaneseq  ;;  %s11_s16 = sld [smem:[#allocation3]] }
   0xd   :  { %10 = vsyncpa [#allocation5], 0  ;;  %s93_s17 = sld [smem:[#allocation3 + $0x1]]  ;;  %s97_s18 = sld [smem:[#allocation3 + $0x3]]  ;;  %v147_v13 = vmov 0.0  }
   0xe   :  { %v15_v1 = vshrl.u32 %v14_v0, 7  ;;  %v17_v2 = vand.u32 127, %v14_v0  ;;  %s100_s19 = sld [smem:[#allocation3 + $0x6]]  ;;  %s103_s0 = sld [smem:[#allocation3 + $0x9]] }
   0xf   :  { %s96_s20 = sld [smem:[#allocation3 + $0x2]]  ;;  %s99_s21 = sld [smem:[#allocation3 + $0x5]] }
  0x10   :  { %v20_v3 = vmul.u32 128, %v15_v1  ;;  %s102_s22 = sld [smem:[#allocation3 + $0x8]]  ;;  %s173_s23 = sld [smem:[#allocation3 + $0x4]] }
  0x11   :  { %s101_s24 = sld [smem:[#allocation3 + $0x7]]  ;;  %s104_s25 = sld [smem:[#allocation3 + $0xa]] }
  0x12   :  { %v21_v4 = vadd.s32 %v20_v3, %v17_v2  ;;  %v24_v6 = vstv %s11_s16  ;;  %s148_s26 = smov [#allocation4]  }
  0x13   :  { %v27_v9 = vstv %s93_s17  ;;  %v46_v19 = vstv %s97_s18  ;;  %s82_s27 = sshll.u32 %s148_s26, 4  ;;  %s83_s27 = int_to_ptr.vmem [resolvable:$true] %s82_s27 }
  0x14   :  { %v22_v5 = vcvt.s32.f32 %v21_v4  ;;  %v57_v20 = vstv %s100_s19  ;;  %v69_v21 = vstv %s103_s0  ;;  %s120_s28 = scalar_lea.vmem %s83_s27, 384  ;;  %p125_p4 = scmp.lt.s32.totalorder %s83_s27, %s83_s27 }
  0x15   :  { %v43_v24 = vstv %s96_s20  ;;  %v54_v25 = vstv %s99_s21  ;;  %p121_p3 = scmp.ne.s32.totalorder %s83_s27, %s120_s28  ;;  %p126_p5 = scmp.lt.s32.totalorder %s120_s28, %s120_s28 }
  0x16   :  { %v23_v7 = vadd.f32 0.5, %v22_v5  ;;  %v66_v26 = vstv %s102_s22  ;;  %v50_v34 = vstv %s173_s23 }
  0x17   :  { %v61_v35 = vstv %s101_s24  ;;  %v73_v36 = vstv %s104_s25  ;;  %p127_p6 = por %p126_p5, %p125_p4 }
  0x18   :  { %v25_v8 = vmul.f32 %v24_v6, %v23_v7 }
  0x19   :  { %p128_p7 = pnand %p127_p6, %p121_p3 }
  0x1a   :  { %v26_v10 = vfloor.f32 %v25_v8 }
  0x1c   :  { %v28_v11 = vmul.f32 %v27_v9, %v26_v10 }
  0x1e   :  { %v29_v12 = vsub.f32 %v22_v5, %v28_v11 }
  0x20   :  { %vm30_vm0 = vcmp.lt.f32.partialorder %v29_v12, 0.0  ;;  %vm33_vm1 = vcmp.ge.f32.partialorder %v29_v12, %v27_v9 }
  0x21   :  { %v94_v14 = vsel %vm30_vm0, 1.0, %v147_v13  ;;  %v95_v15 = vsel %vm33_vm1, 1.0, %v147_v13 }
  0x22   :  { %v36_v16 = vsub.f32 %v26_v10, %v94_v14  ;;  %v38_v17 = vmul.f32 %v94_v14, %v27_v9  ;;  %v40_v18 = vmul.f32 %v95_v15, %v27_v9 }
  0x24   :  { %v37_v22 = vadd.f32 %v95_v15, %v36_v16  ;;  %v39_v23 = vadd.f32 %v38_v17, %v29_v12 }
  0x26   :  { %v41_v27 = vsub.f32 %v39_v23, %v40_v18  ;;  %v47_v28 = vmul.f32 %v46_v19, %v37_v22  ;;  %v58_v29 = vmul.f32 %v57_v20, %v37_v22  ;;  %v70_v30 = vmul.f32 %v69_v21, %v37_v22 }
  0x28   :  { %v44_v31 = vmul.f32 %v43_v24, %v41_v27  ;;  %v55_v32 = vmul.f32 %v54_v25, %v41_v27  ;;  %v67_v33 = vmul.f32 %v66_v26, %v41_v27 }
  0x2a   :  { %v48_v37 = vadd.f32 %v47_v28, %v44_v31  ;;  %v59_v38 = vadd.f32 %v58_v29, %v55_v32  ;;  %v71_v39 = vadd.f32 %v70_v30, %v67_v33 }
  0x2c   :  { %v51_v40 = vadd.f32 %v50_v34, %v48_v37  ;;  %v62_v41 = vadd.f32 %v61_v35, %v59_v38  ;;  %v74_v42 = vadd.f32 %v73_v36, %v71_v39 }
  0x2e   :  { %52 = vst [vmem:[#allocation4] sm:$0xff] %v51_v40  ;;  %64 = vst [vmem:[#allocation4 + $0x8] sm:$0xff] %v62_v41 }
  0x2f   :  { %76 = vst [vmem:[#allocation4 + $0x10] sm:$0xff] %v74_v42 }
  0x30   :  { %131 = shalt.err (!%p128_p7)
}
  0x31   :  { %s132_s2 = scalar_lea.hbm %s189_s1, 384 }
  0x32   :  { %p133_p8 = scmp.ne.s32.totalorder %s189_s1, %s132_s2  ;;  %p136_p9 = scmp.lt.u32.totalorder %s132_s2, %s189_s1 }
  0x34   :  { %p138_p10 = pnand %p136_p9, %p133_p8 }
  0x36   :  { %141 = shalt.err (!%p138_p10)
}
  0x37   :  { %s149_s7 = smov 128   ;;  %s150_s8 = smov 8  }
  0x38   :  { %88 = dma.vmem_to_hbm [thread:$0]  %s83_s27, 384, %s189_s1, [#allocation5], %s149_s7, %s149_s7, %s150_s8  }
  0x39   :  { %144 = dma.done.wait [#allocation5], 384  }
  0x3a   :  { %145 = vsyncadd [#allocation5], 4294966912 }
  0x3b   :  { %92 = vsyncpa [#allocation5], 1 }

</bundles_post_ra>
